<compile_context>
chip_gen: v5e
topology: v5e:2x2
jax: 0.10.0
libtpu: 0.0.40
codegen_flags: <defaults>
</compile_context>

<pallas_src>
import functools

import jax
import jax.numpy as jnp
import numpy as np
from jax.experimental import pallas as pl
from jax.experimental.pallas import tpu as pltpu


def _round_up(n, m):
    return (n + m - 1) // m * m


# ----------------------------------------------------------------------------
# Pallas kernels: one GraphConvolution layer, out = act(adj @ (x @ W) + b)
# grid = (num_row_tiles, num_col_tiles); the col axis is the reduction axis.
# ----------------------------------------------------------------------------
def _make_gcn_layer_kernel(apply_relu, use_scratch):
    def _tile_contrib(x_ref, w_ref, adj_ref):
        # Dense projection for this column tile of nodes: (TK, F_out), bf16 in,
        # f32 MXU accumulation, rounded to bf16 for the aggregation matmul
        # (cast is (TK, F_out) -- small next to the (TM, TK) adj tile).
        support = jnp.dot(x_ref[...], w_ref[...],
                          preferred_element_type=jnp.float32
                          ).astype(jnp.bfloat16)
        # Sparse-as-dense aggregation: native bf16 MXU, f32 accumulation.
        return jnp.dot(adj_ref[...], support,
                       preferred_element_type=jnp.float32)

    if use_scratch:
        # f32 scratch accumulator; single lane-dense finalize store (used when
        # the layer output dtype is bf16, e.g. the inter-layer activation).
        def kernel(x_ref, w_ref, b_ref, adj_ref, out_ref, acc_ref):
            k = pl.program_id(1)

            @pl.when(k == 0)
            def _():
                # Fold the bias into the accumulator init.
                acc_ref[...] = jnp.broadcast_to(b_ref[...], acc_ref.shape)

            acc_ref[...] += _tile_contrib(x_ref, w_ref, adj_ref)

            @pl.when(k == pl.num_programs(1) - 1)
            def _():
                o = acc_ref[...]
                if apply_relu:
                    o = jnp.maximum(o, 0.0)
                out_ref[...] = o.astype(out_ref.dtype)
    else:
        # f32 output block is resident across the reduction axis (index_map is
        # constant in k) -> accumulate directly into it, no scratch needed.
        def kernel(x_ref, w_ref, b_ref, adj_ref, out_ref):
            k = pl.program_id(1)

            @pl.when(k == 0)
            def _():
                out_ref[...] = jnp.broadcast_to(b_ref[...], out_ref.shape)

            out_ref[...] += _tile_contrib(x_ref, w_ref, adj_ref)

            if apply_relu:
                @pl.when(k == pl.num_programs(1) - 1)
                def _():
                    out_ref[...] = jnp.maximum(out_ref[...], 0.0)

    return kernel


def gcn_layer(x_pad, adj_pad, w, b, *, apply_relu, out_dtype, tm, tk):
    """One GraphConvolution layer on pre-padded inputs: act(adj @ (x @ w) + b).

    x_pad:   (n_cols_pad, f_in)       -- node features (rows padded to tk grid)
    adj_pad: (n_rows_pad, n_cols_pad) -- adjacency, bf16, rectangular-padded
    Returns (n_rows_pad, f_out) in out_dtype.
    """
    n_rows, n_cols = adj_pad.shape
    nc, f_in = x_pad.shape
    f_out = w.shape[1]
    assert nc == n_cols, (nc, n_cols)
    assert n_rows % tm == 0 and n_cols % tk == 0

    # Zero-pad the output feature dim to a lane-dense multiple of 128.
    f_out_p = _round_up(f_out, 128)
    w_p = w.astype(jnp.bfloat16)
    b_p = b.astype(jnp.float32).reshape(1, f_out)
    if f_out_p != f_out:
        w_p = jnp.pad(w_p, ((0, 0), (0, f_out_p - f_out)))
        b_p = jnp.pad(b_p, ((0, 0), (0, f_out_p - f_out)))
    x_bf = x_pad.astype(jnp.bfloat16)

    use_scratch = jnp.dtype(out_dtype) != jnp.dtype(jnp.float32)
    kernel = _make_gcn_layer_kernel(apply_relu, use_scratch)
    scratch_shapes = ([pltpu.VMEM((tm, f_out_p), jnp.float32)]
                      if use_scratch else [])

    # VMEM budget from the real footprint (double-buffered inputs + resident
    # output + optional scratch), capped at 48 MiB (v7x-safe).
    out_bytes = jnp.dtype(out_dtype).itemsize
    vmem_bytes = (2 * (tm * tk * 2 + tk * f_in * 2 + f_in * f_out_p * 2
                       + f_out_p * 4)
                  + 2 * tm * f_out_p * out_bytes
                  + (tm * f_out_p * 4 if use_scratch else 0)
                  + (8 << 20))                      # compiler scratch headroom
    vmem_limit = int(min(max(vmem_bytes, 32 << 20), 48 << 20))

    out = pl.pallas_call(
        kernel,
        out_shape=jax.ShapeDtypeStruct((n_rows, f_out_p), out_dtype),
        grid_spec=pltpu.PrefetchScalarGridSpec(
            num_scalar_prefetch=0,
            grid=(n_rows // tm, n_cols // tk),
            in_specs=[
                pl.BlockSpec((tk, f_in), lambda i, k: (k, 0)),      # x col tile
                pl.BlockSpec((f_in, f_out_p), lambda i, k: (0, 0)),  # W resident
                pl.BlockSpec((1, f_out_p), lambda i, k: (0, 0)),     # bias
                pl.BlockSpec((tm, tk), lambda i, k: (i, k)),         # adj tile
            ],
            out_specs=pl.BlockSpec((tm, f_out_p), lambda i, k: (i, 0)),
            scratch_shapes=scratch_shapes,
        ),
        compiler_params=pltpu.CompilerParams(
            dimension_semantics=("parallel", "arbitrary"),
            vmem_limit_bytes=vmem_limit,
        ),
    )(x_bf, w_p, b_p, adj_pad)

    if f_out_p != f_out:
        out = out[:, :f_out]
    return out


def gcn_forward(x, adj, params, *, tm=512, tk=1024):
    """GCN.forward in eval mode (dropout is identity)."""
    (w1, b1), (w2, b2) = params
    n, _ = x.shape
    assert adj.shape == (n, n)

    # Clamp tiles for small graphs.  tm is a multiple of 16 (bf16 adj packs
    # two rows per sublane); tk a multiple of 128 (lane width).
    tm = min(tm, _round_up(n, 16))
    tk = min(tk, _round_up(n, 128))
    # Keep >= 2 row tiles so the "parallel" row axis can feed both v7x
    # TensorCores (grow the reduction tile tk instead on small graphs).
    if n > 16 and -(-n // tm) < 2:
        tm = _round_up(-(-n // 2), 16)

    # Independent row/col padding (no lcm blow-up); pad adj ONCE for both
    # layers.  bf16 storage is exact for a 0/1 adjacency mask.
    # TODO(synk): a degree-normalized adjacency is not exactly representable in
    #             bf16; pass it as f32 (and drop the bf16 cast) if needed.
    n_rows = _round_up(n, tm)
    n_cols = _round_up(n, tk)
    adj_p = adj.astype(jnp.bfloat16)
    if (n_rows, n_cols) != (n, n):
        adj_p = jnp.pad(adj_p, ((0, n_rows - n), (0, n_cols - n)))

    x_p = x if n_cols == n else jnp.pad(x, ((0, n_cols - n), (0, 0)))

    # Layer 1: bf16 intermediate (f32 accumulation in-kernel) + ReLU.
    h = gcn_layer(x_p, adj_p, w1, b1, apply_relu=True,
                  out_dtype=jnp.bfloat16, tm=tm, tk=tk)

    # F.dropout(h, p, training=False) -> identity.
    # Re-shape h's node axis to the column-tile grid of layer 2.  Rows >= n of
    # h hold relu(b1) but are multiplied by all-zero padded adj columns.
    if n_rows == n_cols:
        h_in = h
    elif n_rows > n_cols:
        h_in = h[:n_cols]
    else:
        h_in = jnp.pad(h, ((0, n_cols - n_rows), (0, 0)))

    # Layer 2: f32 output, accumulated directly into the output block.
    out = gcn_layer(h_in, adj_p, w2, b2, apply_relu=False,
                    out_dtype=jnp.float32, tm=tm, tk=tk)
    return out[:n]


# ----------------------------------------------------------------------------
# Pure-JAX references for correctness checks
# ----------------------------------------------------------------------------
def gcn_reference(x, adj, params):
    """Full-f32 reference (original module semantics)."""
    (w1, b1), (w2, b2) = params
    a = adj.astype(jnp.float32)
    h = jnp.maximum(a @ (x @ w1) + b1[None, :], 0.0)
    return a @ (h @ w2) + b2[None, :]


def gcn_reference_matched(x, adj, params):
    """Reference that emulates the kernel's bf16 rounding points
    (bf16 inputs to both matmuls, bf16 support, bf16 inter-layer h),
    with f32 accumulation everywhere -- matches the kernel closely."""
    (w1, b1), (w2, b2) = params
    a = adj.astype(jnp.float32)

    def bf(v):
        return v.astype(jnp.bfloat16).astype(jnp.float32)

    def layer(xx, w, b, relu):
        s = bf(jnp.dot(bf(xx), bf(w), precision=jax.lax.Precision.HIGHEST))
        o = jnp.dot(a, s, precision=jax.lax.Precision.HIGHEST) + b[None, :]
        return jnp.maximum(o, 0.0) if relu else o

    h = bf(layer(x, w1, b1, True))
    return layer(h, w2, b2, False)


# ----------------------------------------------------------------------------
# Deterministic parameter construction (mirrors GraphConvolution init:
# stdv = 1/sqrt(out_features), weight/bias ~ U(-stdv, stdv))
# ----------------------------------------------------------------------------
def make_params(key, nfeat, nhid, nout):
    kw1, kb1, kw2, kb2 = jax.random.split(key, 4)
    s1 = 1.0 / np.sqrt(nhid)
    w1 = jax.random.uniform(kw1, (nfeat, nhid), jnp.float32, -s1, s1)
    b1 = jax.random.uniform(kb1, (nhid,), jnp.float32, -s1, s1)
    s2 = 1.0 / np.sqrt(nout)
    w2 = jax.random.uniform(kw2, (nhid, nout), jnp.float32, -s2, s2)
    b2 = jax.random.uniform(kb2, (nout,), jnp.float32, -s2, s2)
    return ((w1, b1), (w2, b2))


if __name__ == "__main__":
    # N=300 exercises rectangular row/col padding; nout=32 exercises the
    # output-feature padding to 128.
    N, nfeat, nhid, nout = 300, 64, 128, 32
    key = jax.random.PRNGKey(0)
    kx, ka, kp = jax.random.split(key, 3)

    x = jax.random.normal(kx, (N, nfeat), jnp.float32)

    # Dense symmetric 0/1 adjacency with self loops (exact in bf16).
    adj = (jax.random.uniform(ka, (N, N)) < 0.05).astype(jnp.float32)
    adj = jnp.maximum(adj, adj.T)
    adj = jnp.maximum(adj, jnp.eye(N, dtype=jnp.float32))

    params = make_params(kp, nfeat, nhid, nout)

    # Small tiles so the test exercises a multi-tile grid with accumulation
    # over the column (reduction) axis; production defaults are tm=512, tk=1024.
    out = gcn_forward(x, adj, params, tm=128, tk=128)
    out = jax.block_until_ready(out)
    out_np = np.asarray(out)

    # Tight check vs the precision-matched reference (same bf16 rounding
    # points, f32 accumulation) ...
    ref_match = np.asarray(gcn_reference_matched(x, adj, params))
    np.testing.assert_allclose(out_np, ref_match, rtol=5e-3, atol=2e-2)

    # ... and a looser sanity check vs the full-f32 module semantics
    # (bf16 streaming of x/W/support/h introduces ~1% relative error).
    ref_f32 = np.asarray(gcn_reference(x, adj, params))
    np.testing.assert_allclose(out_np, ref_f32, rtol=5e-2, atol=3e-1)

    print("KERNEL_OK")
</pallas_src>

<mosaic_0001>
module attributes {stable_mosaic.version = 11 : i64} {
  func.func @kernel(%arg0: i32, %arg1: i32, %arg2: memref<128x64xbf16, #tpu.memory_space<vmem>>, %arg3: memref<64x128xbf16, #tpu.memory_space<vmem>>, %arg4: memref<1x128xf32, #tpu.memory_space<vmem>>, %arg5: memref<128x128xbf16, #tpu.memory_space<vmem>>, %arg6: memref<128x128xbf16, #tpu.memory_space<vmem>>, %arg7: memref<128x128xf32, #tpu.memory_space<vmem>>) attributes {dimension_semantics = [#tpu.dimension_semantics<parallel>, #tpu.dimension_semantics<arbitrary>], iteration_bounds = array<i64: 3, 3>, scalar_prefetch = 0 : i64, scratch_operands = 1 : i64, tpu.core_type = #tpu.core_type<tc>, window_params = [{transform_indices = @transform_0, window_bounds = array<i64: 128, 64>}, {pipeline_mode = #tpu.pipeline_mode<synchronous>, transform_indices = @transform_1, window_bounds = array<i64: 64, 128>}, {pipeline_mode = #tpu.pipeline_mode<synchronous>, transform_indices = @transform_2, window_bounds = array<i64: 1, 128>}, {transform_indices = @transform_3, window_bounds = array<i64: 128, 128>}, {transform_indices = @transform_4, window_bounds = array<i64: 128, 128>}]} {
    %c0_i32 = arith.constant 0 : i32
    %0 = arith.cmpi eq, %arg1, %c0_i32 : i32
    %1 = arith.extui %0 : i1 to i32
    %c0_i32_0 = arith.constant 0 : i32
    %2 = arith.cmpi ne, %1, %c0_i32_0 : i32
    scf.if %2 {
      %c0_12 = arith.constant 0 : index
      %c0_13 = arith.constant 0 : index
      %15 = vector.load %arg4[%c0_12, %c0_13] : memref<1x128xf32, #tpu.memory_space<vmem>>, vector<1x128xf32>
      %16 = vector.shape_cast %15 : vector<1x128xf32> to vector<1x128xf32>
      %17 = vector.broadcast %16 : vector<1x128xf32> to vector<128x128xf32>
      %c0_14 = arith.constant 0 : index
      %c0_15 = arith.constant 0 : index
      %18 = vector.load %arg7[%c0_14, %c0_15] : memref<128x128xf32, #tpu.memory_space<vmem>>, vector<128x128xf32>
      tpu.vector_store %arg7[%c0_14, %c0_15], %17 {strides = array<i32>} : memref<128x128xf32, #tpu.memory_space<vmem>>, vector<128x128xf32>,
    } else {
    }
    %c0 = arith.constant 0 : index
    %c0_1 = arith.constant 0 : index
    %3 = vector.load %arg7[%c0, %c0_1] : memref<128x128xf32, #tpu.memory_space<vmem>>, vector<128x128xf32>
    %c0_2 = arith.constant 0 : index
    %c0_3 = arith.constant 0 : index
    %4 = vector.load %arg2[%c0_2, %c0_3] : memref<128x64xbf16, #tpu.memory_space<vmem>>, vector<128x64xbf16>
    %c0_4 = arith.constant 0 : index
    %c0_5 = arith.constant 0 : index
    %5 = vector.load %arg3[%c0_4, %c0_5] : memref<64x128xbf16, #tpu.memory_space<vmem>>, vector<64x128xbf16>
    %cst = arith.constant dense<0.000000e+00> : vector<128x128xf32>
    %6 = tpu.matmul %4, %5, %cst {dimension_numbers = #tpu.dot_dimension_numbers<[1], [0], [0], [1], [0, 0, 1, 1], [], []>} : vector<128x64xbf16>, vector<64x128xbf16>, vector<128x128xf32> -> vector<128x128xf32>
    %7 = arith.truncf %6 : vector<128x128xf32> to vector<128x128xbf16>
    %c0_6 = arith.constant 0 : index
    %c0_7 = arith.constant 0 : index
    %8 = vector.load %arg5[%c0_6, %c0_7] : memref<128x128xbf16, #tpu.memory_space<vmem>>, vector<128x128xbf16>
    %cst_8 = arith.constant dense<0.000000e+00> : vector<128x128xf32>
    %9 = tpu.matmul %8, %7, %cst_8 {dimension_numbers = #tpu.dot_dimension_numbers<[1], [0], [0], [1], [0, 0, 1, 1], [], []>} : vector<128x128xbf16>, vector<128x128xbf16>, vector<128x128xf32> -> vector<128x128xf32>
    %10 = arith.addf %3, %9 : vector<128x128xf32>
    %c0_9 = arith.constant 0 : index
    %c0_10 = arith.constant 0 : index
    %11 = vector.load %arg7[%c0_9, %c0_10] : memref<128x128xf32, #tpu.memory_space<vmem>>, vector<128x128xf32>
    tpu.vector_store %arg7[%c0_9, %c0_10], %10 {strides = array<i32>} : memref<128x128xf32, #tpu.memory_space<vmem>>, vector<128x128xf32>,
    %c2_i32 = arith.constant 2 : i32
    %12 = arith.cmpi eq, %arg1, %c2_i32 : i32
    %13 = arith.extui %12 : i1 to i32
    %c0_i32_11 = arith.constant 0 : i32
    %14 = arith.cmpi ne, %13, %c0_i32_11 : i32
    scf.if %14 {
      %c0_12 = arith.constant 0 : index
      %c0_13 = arith.constant 0 : index
      %15 = vector.load %arg7[%c0_12, %c0_13] : memref<128x128xf32, #tpu.memory_space<vmem>>, vector<128x128xf32>
      %cst_14 = arith.constant 0.000000e+00 : f32
      %16 = vector.broadcast %cst_14 : f32 to vector<128x128xf32>
      %17 = arith.maximumf %15, %16 : vector<128x128xf32>
      %18 = arith.truncf %17 : vector<128x128xf32> to vector<128x128xbf16>
      %c0_15 = arith.constant 0 : index
      %c0_16 = arith.constant 0 : index
      %19 = vector.load %arg6[%c0_15, %c0_16] : memref<128x128xbf16, #tpu.memory_space<vmem>>, vector<128x128xbf16>
      tpu.vector_store %arg6[%c0_15, %c0_16], %18 {strides = array<i32>} : memref<128x128xbf16, #tpu.memory_space<vmem>>, vector<128x128xbf16>,
    } else {
    }
    return
  }
  func.func @transform_0(%arg0: i32, %arg1: i32) -> (i32, i32) {
    %c0_i32 = arith.constant 0 : i32
    %c0_i32_0 = arith.constant 0 : i32
    return %arg1, %c0_i32 : i32, i32
  }
  func.func @transform_1(%arg0: i32, %arg1: i32) -> (i32, i32) {
    %c0_i32 = arith.constant 0 : i32
    %c0_i32_0 = arith.constant 0 : i32
    %c0_i32_1 = arith.constant 0 : i32
    return %c0_i32, %c0_i32_0 : i32, i32
  }
  func.func @transform_2(%arg0: i32, %arg1: i32) -> (i32, i32) {
    %c0_i32 = arith.constant 0 : i32
    %c0_i32_0 = arith.constant 0 : i32
    %c0_i32_1 = arith.constant 0 : i32
    return %c0_i32, %c0_i32_0 : i32, i32
  }
  func.func @transform_3(%arg0: i32, %arg1: i32) -> (i32, i32) {
    %c0_i32 = arith.constant 0 : i32
    return %arg0, %arg1 : i32, i32
  }
  func.func @transform_4(%arg0: i32, %arg1: i32) -> (i32, i32) {
    %c0_i32 = arith.constant 0 : i32
    %c0_i32_0 = arith.constant 0 : i32
    return %arg0, %c0_i32 : i32, i32
  }
}

</mosaic_0001>

<bundles_post_ra>
// kernel: tpu_custom_call.1
= control target key start
LH: loop header
LB: loop body
LE: loop exit
PB: predicated region body
PF: predicated region fallthrough
CT: control target
= control target key end

     0   :  { %9 = vsyncpa [#allocation4], 0  ;;  %s1499_s0 = inlined_call_operand.vmem [shape: bf16[384,64], index: 0, kind: input, shape index: {}]   ;;  %s1500_s1 = inlined_call_operand.vmem [shape: bf16[64,128], index: 1, kind: input, shape index: {}]   ;;  %s1501_s2 = inlined_call_operand.vmem [shape: f32[1,128], index: 2, kind: input, shape index: {}]   ;;  %s1502_s3 = inlined_call_operand.hbm [shape: bf16[384,384], index: 3, kind: input, shape index: {}]   ;;  %s1503_s4 = inlined_call_operand.hbm [shape: bf16[384,128], index: 4, kind: output, shape index: {}]  }
   0x1   :  { %11 = vsyncpa [#allocation4 + $0x1], 0 }
   0x2   :  { %12 = vsyncpa [#allocation5], 0 }
   0x3   :  { %14 = vsyncpa [#allocation5 + $0x1], 0  ;;  %s1277_s15 = smov 0   ;;  %s1279_s16 = smov 0  }
   0x4   :  { %s1281_s17 = smov 0   ;;  %s1283_s18 = smov 0  }
   0x5   :  { %s1285_s19 = smov 0   ;;  %s1287_s20 = smov 0  }
   0x6   :  { %s1289_s21 = smov 0   ;;  %s1291_s22 = smov 0  }
   0x7   :  { %s1293_s23 = smov 0   ;;  %s1295_s24 = smov 0  }
   0x8   :  { %s1297_s25 = smov 0  }
   0x9 LB: > { %1509 = sst [smem:[#allocation9_spill]] %s1213_s17  ;;  %s796_s26 = sadd.s32 4294967295, %s1245_s25   ;;  %s1245_s25 = sphi %s1297_s25, %s20_s25   ;;  %s1241_s24 = sphi %s1295_s24, %s1534_s24   ;;  %s1237_s23 = sphi %s1293_s23, %s1533_s23   ;;  %s1233_s22 = sphi %s1291_s22, %s1532_s22   ;;  %s1229_s21 = sphi %s1289_s21, %s1531_s21   ;;  %s1225_s20 = sphi %s1287_s20, %s1524_s20   ;;  %s1221_s19 = sphi %s1285_s19, %s1530_s19   ;;  %s1217_s18 = sphi %s1283_s18, %s1529_s18   ;;  %s1213_s17 = sphi %s1281_s17, %s1522_s17   ;;  %s1209_s16 = sphi %s1279_s16, %s1528_s16   ;;  %s1205_s15 = sphi %s1277_s15, %s1527_s15  }
   0xa   : > { %1510 = sst [smem:[#allocation10_spill]] %s1225_s20  ;;  %s797_s27 = sadd.s32 4294967294, %s1245_s25  }
   0xb   : > { %s29_s28 = sadd.s32 1, %s1237_s23  ;;  %s32_s29 = sadd.s32 1, %s1241_s24 }
   0xc   : > { %p30_p0 = scmp.ge.s32.totalorder %s29_s28, 3  ;;  %s109_s30 = sadd.s32 1, %s1225_s20 }
   0xd   : > { %p116_p1 = scmp.ne.s32.totalorder %s1225_s20, %s1221_s19  ;;  %p117_p2 = scmp.eq.s32.totalorder %s1245_s25, 0 }
   0xe   : > { %s1536_s28 = smov (%p30_p0, %s29_s28), 0  ;;  %s1538_s29 = smov (!%p30_p0, %s32_s29), %s1241_s24 }
   0xf   : > { %1511 = sst [smem:[#allocation11_spill]] %s1536_s28  ;;  %s105_s5 = ssub.s32 %s1237_s23, %s1536_s28 }
  0x10   : > { %p1343_p3 = por %p117_p2, %p116_p1  ;;  %p34_p4 = scmp.ge.s32.totalorder %s1538_s29, 3 }
  0x11   : > { %p122_p5 = scmp.ne.s32.totalorder %s1221_s19, %s1217_s18  ;;  %p123_p6 = scmp.eq.s32.totalorder %s796_s26, 0 }
  0x12   : > { %s135_s7 = sadd.s32 1, %s1213_s17  ;;  %s1540_s29 = smov (%p34_p4, %s1538_s29), 0 }
  0x13   : > { %1513 = sst [smem:[#allocation12_spill]] %s1540_s29  ;;  %p1351_p7 = por %p123_p6, %p122_p5 }
  0x14   : > { %p145_p8 = scmp.ne.s32.totalorder %s1213_s17, %s1209_s16  ;;  %s104_s9 = ssub.s32 %s1241_s24, %s1540_s29 }
  0x15   : > { %p146_p9 = scmp.eq.s32.totalorder %s796_s26, 8  ;;  %s106_s10 = sor.u32 %s105_s5, %s104_s9 }
  0x16   : > { %p133_p10 = scmp.eq.s32.totalorder %s104_s9, 0  ;;  %p107_p11 = scmp.eq.s32.totalorder %s106_s10, 0 }
  0x17   : > { %p1359_p12 = por %p146_p9, %p145_p8  ;;  %p151_p13 = scmp.ne.s32.totalorder %s1209_s16, %s1205_s15 }
  0x18   : > { %s1364_s12 = scalar_select %p133_p10, %s1213_s17, %s135_s7  }
  0x19   : > { %s1367_s13 = scalar_select %p107_p11, %s1225_s20, %s109_s30  }
  0x1a   : > { %1516 = sst [smem:[#allocation13_spill]] %s1364_s12  ;;  %p152_p0 = scmp.eq.s32.totalorder %s797_s27, 8 }
  0x1b   : > { %1517 = sst [smem:[#allocation14_spill]] %s1367_s13  ;;  %p997_p1 = scmp.lt.s32.totalorder %s1245_s25, 9 }
  0x1c   : > { %p1372_p2 = por %p152_p0, %p151_p13  ;;  %s187_s18 = sand.u32 1, %s1225_s20  }
  0x1d   : > { %s800_s26 = sshll.u32 %s187_s18, 6  ;;  %s984_s5 = smul.u32 48, %s1241_s24 }
  0x1e   : > { %s1518_s14 = scalar_select %p1372_p2, 1, 0 }
  0x1f   : > { %s191_s9 = scalar_lea.vmem [#allocation3], %s800_s26  ;;  %p990_p4 = pnand %p997_p1, %p1343_p3 }
  0x20   : > { %1519 = sst [smem:[#allocation15_spill]] %s1518_s14  ;;  %s201_s10 = sshll.u32 %s191_s9, 4  ;;  %s202_s10 = int_to_ptr.vmem [resolvable:$true] %s201_s10 }
  0x21   : > { %s196_s7 = sadd.s32 %s1237_s23, %s984_s5  ;;  %s188_s12 = scalar_lea.sflag [#allocation4], %s187_s18 }
  0x22   : > { %s803_s30 = sshll.u32 %s196_s7, 2  ;;  %s1247_s17 = smov 192  }
  0x23   : > { %s198_s27 = scalar_lea.hbm %s1502_s3, %s803_s30  ;;  %s1248_s20 = smov 64  }
  0x24   : > { %s199_s13 = sshll.u32 %s198_s27, 4  ;;  %s1249_s14 = smov 4   ;;  %s200_s13 = int_to_ptr.hbm [resolvable:$true] %s199_s13 }
  0x25   : > { %992 = dma.hbm_to_vmem [thread:$0]  (!%p990_p4), %s200_s13, 1024, %s202_s10, %s188_s12, %s1247_s17, %s1248_s20, %s1249_s14  }
  0x26   : > { %p804_p5 = scmp.ge.s32.totalorder %s1245_s25, 1  ;;  %p209_p6 = scmp.lt.s32.totalorder %s1245_s25, 10 }
  0x28   : > { %p210_p8 = pnand %p804_p5, %p209_p6 }
  0x29   : > { %s215_s6 = sand.u32 (!%p210_p8), 1, %s1221_s19  }
  0x2a   : > { %213 = sbr.rel (%p210_p8) target bundleno = 529 (0x211), region = 36  ;;  %s805_s26 = sshll.u32 (!%p210_p8), %s215_s6, 6 }
  0x2b   : > { %s216_s5 = scalar_lea.sflag (!%p210_p8), [#allocation4], %s215_s6  ;;  %s1387_s9 = scalar_lea.vmem (!%p210_p8), [#allocation3], %s805_s26 }
  0x2f   : > { %1196 = dma.done.wait (%p1351_p7), %s216_s5, 1024  }
  0x30   : > { %1198 = vsyncadd (%p1351_p7), %s216_s5, 4294966272  ;;  %s247_s17 = sand.u32 1, %s1209_s16   ;;  %s807_s20 = sshll.u32 %s1229_s21, 4 }
  0x31   : > { %s806_s28 = sshll.u32 %s247_s17, 6  ;;  %p251_p3 = scmp.lt.s32.totalorder %s807_s20, 47 }
  0x32   : > { %s1402_s18 = scalar_lea.vmem [#allocation6], %s806_s28  ;;  %p809_p9 = scmp.ne.s32.totalorder %s1229_s21, 0 }
  0x33   : > { %s1542_s20 = smov (!%p251_p3, %s807_s20), 47 }
  0x34   : > { %s808_s29 = sshll.u32 %s1542_s20, 2  ;;  %262 = sbr.rel (%p809_p9) target bundleno = 74 (0x4a), region = 44 }
  0x35   : > { %s1400_s14 = scalar_lea.vmem %s1499_s0, %s808_s29 }
  0x39   : > { %v1092_v0 = vld [vmem:[%s1501_s2] ss:$0 sm:$0xff] }
  0x3a   : > { %267 = vst [vmem:[#allocation2 + $0x30] sm:$0xff] %v1092_v0 }
  0x3b   : > { %268 = vst [vmem:[#allocation2] sm:$0xff] %v1092_v0 }
  0x3c   : > { %269 = vst [vmem:[#allocation2 + $0x58] sm:$0xff] %v1092_v0 }
  0x3d   : > { %270 = vst [vmem:[#allocation2 + $0x18] sm:$0xff] %v1092_v0 }
  0x3e   : > { %271 = vst [vmem:[#allocation2 + $0x50] sm:$0xff] %v1092_v0 }
  0x3f   : > { %272 = vst [vmem:[#allocation2 + $0x68] sm:$0xff] %v1092_v0 }
  0x40   : > { %273 = vst [vmem:[#allocation2 + $0x8] sm:$0xff] %v1092_v0 }
  0x41   : > { %274 = vst [vmem:[#allocation2 + $0x48] sm:$0xff] %v1092_v0 }
  0x42   : > { %275 = vst [vmem:[#allocation2 + $0x40] sm:$0xff] %v1092_v0 }
  0x43   : > { %276 = vst [vmem:[#allocation2 + $0x20] sm:$0xff] %v1092_v0 }
  0x44   : > { %277 = vst [vmem:[#allocation2 + $0x10] sm:$0xff] %v1092_v0 }
  0x45   : > { %278 = vst [vmem:[#allocation2 + $0x38] sm:$0xff] %v1092_v0 }
  0x46   : > { %279 = vst [vmem:[#allocation2 + $0x60] sm:$0xff] %v1092_v0 }
  0x47   : > { %280 = vst [vmem:[#allocation2 + $0x70] sm:$0xff] %v1092_v0 }
  0x48   : > { %281 = vst [vmem:[#allocation2 + $0x78] sm:$0xff] %v1092_v0 }
  0x49   : > { %282 = vst [vmem:[#allocation2 + $0x28] sm:$0xff] %v1092_v0 }
  0x4a PF: > { %v915_v1 = vld [vmem:[%s1500_s1 + $0x18] sm:$0xff]  ;;  %v914_v2 = vld [vmem:[%s1500_s1 + $0x10] sm:$0xff]  ;;  %v913_v3 = vld [vmem:[%s1500_s1 + $0x8] sm:$0xff]  ;;  %vm387_vm0 = vcmask 523264   ;;  %p898_p7 = scmp.ne.s32.totalorder %s1229_s21, 2 }
  0x4b   : > { %416 = vmatpush.bf16.msra.mxu0 %v915_v1  ;;  %972 = vmatpush.bf16.msra.mxu3 %v915_v1  ;;  %v912_v4 = vld [vmem:[%s1500_s1] sm:$0xff]  ;;  %v909_v6 = vld [vmem:[%s1400_s14 + $0x28] sm:$0xff]  ;;  %v910_v8 = vld [vmem:[%s1400_s14 + $0x30] sm:$0xff] }
  0x4c   : > { %v904_v5 = vld [vmem:[%s1400_s14] sm:$0xff]  ;;  %v905_v7 = vld [vmem:[%s1400_s14 + $0x8] sm:$0xff]  ;;  %v906_v9 = vld [vmem:[%s1400_s14 + $0x10] sm:$0xff] }
  0x4d   : > { %v911_v10 = vld [vmem:[%s1400_s14 + $0x38] sm:$0xff]  ;;  %v908_v12 = vld [vmem:[%s1400_s14 + $0x20] sm:$0xff]  ;;  %v917_v39 = vld [vmem:[%s1387_s9 + $0x8] sm:$0xff] }
  0x4e   : > { %v907_v11 = vld [vmem:[%s1400_s14 + $0x18] sm:$0xff]  ;;  %v916_v37 = vld [vmem:[%s1387_s9] sm:$0xff]  ;;  %v921_v40 = vld [vmem:[%s1387_s9 + $0x28] sm:$0xff] }
  0x4f   : > { %417 = vmatpush.bf16.msra.mxu0 %v914_v2  ;;  %973 = vmatpush.bf16.msra.mxu3 %v914_v2  ;;  %v920_v38 = vld [vmem:[%s1387_s9 + $0x20] sm:$0xff]  ;;  %v918_v41 = vld [vmem:[%s1387_s9 + $0x10] sm:$0xff]  ;;  %v919_v43 = vld [vmem:[%s1387_s9 + $0x18] sm:$0xff] }
  0x50   : > { %v922_v42 = vld [vmem:[%s1387_s9 + $0x30] sm:$0xff]  ;;  %v923_v44 = vld [vmem:[%s1387_s9 + $0x38] sm:$0xff]  ;;  %v291_v48 = vld [vmem:[#allocation2 + $0x40] sm:$0xff] }
  0x51   : > { %v283_v45 = vld [vmem:[#allocation2 + $0x30] sm:$0xff]  ;;  %v284_v50 = vld [vmem:[#allocation2] sm:$0xff]  ;;  %v285_v56 = vld [vmem:[#allocation2 + $0x58] sm:$0xff] }
  0x52   : > { %v292_v54 = vld [vmem:[#allocation2 + $0x20] sm:$0xff]  ;;  %v293_v60 = vld [vmem:[#allocation2 + $0x10] sm:$0xff]  ;;  %v286_v62 = vld [vmem:[#allocation2 + $0x18] sm:$0xff] }
  0x53   : > { %418 = vmatpush.bf16.msra.mxu0 %v913_v3  ;;  %974 = vmatpush.bf16.msra.mxu3 %v913_v3  ;;  %v294_v2 = vld [vmem:[#allocation2 + $0x38] sm:$0xff] }
  0x57   : > { %419 = vmatpush.bf16.msra.mxu0 %v912_v4  ;;  %975 = vmatpush.bf16.msra.mxu3 %v912_v4  ;;  %v287_v4 = vld [vmem:[#allocation2 + $0x50] sm:$0xff] }
  0x5a   : > { %858 = vmatmul.msk.bf16.vlgmr.msra.gmra.mxu0 %vm387_vm0, %v904_v5  ;;  %863 = vmatmul.msk.bf16.vlgmr.msra.gmra.mxu3 %vm387_vm0, %v909_v6 }
  0x6a   : > { %859 = vmatmul.msk.bf16.gmra.mxu0 %vm387_vm0, %v905_v7  ;;  %864 = vmatmul.msk.bf16.gmra.mxu3 %vm387_vm0, %v910_v8  ;;  %v295_v8 = vld [vmem:[#allocation2 + $0x60] sm:$0xff] }
  0x7a   : > { %860 = vmatmul.msk.bf16.gmra.mxu0 %vm387_vm0, %v906_v9  ;;  %865 = vmatmul.msk.bf16.gmra.mxu3 %vm387_vm0, %v911_v10  ;;  %v288_v10 = vld [vmem:[#allocation2 + $0x68] sm:$0xff] }
  0x8a   : > { %861 = vmatmul.msk.bf16.gmra.mxu0 %vm387_vm0, %v907_v11 }
  0x9a   : > { %862 = vmatmul.msk.bf16.gmra.mxu0 %vm387_vm0, %v908_v12 }
  0xd7   : > { %v421_v13 = vpop.f32.mrf.mxu0 }
  0xdd   : > { %v446_v14 = vpop.f32.mrf.mxu3 }
  0xdf   : > { %v423_v15 = vpop.f32.mrf.mxu0 }
  0xe0   : > { %v461_v16 = vpack.c.bf16 %v423_v15, %v421_v13 }
  0xe5   : > { %v448_v17 = vpop.f32.mrf.mxu3 }
  0xe6   : > { %v466_v29 = vpack.c.bf16 %v448_v17, %v446_v14  ;;  %v296_v14 = vld [vmem:[#allocation2 + $0x70] sm:$0xff] }
  0xe7   : > { %v426_v18 = vpop.f32.mrf.mxu0 }
  0xed   : > { %v451_v19 = vpop.f32.mrf.mxu3 }
  0xef   : > { %v428_v20 = vpop.f32.mrf.mxu0 }
  0xf0   : > { %v462_v36 = vpack.c.bf16 %v428_v20, %v426_v18  ;;  %v297_v20 = vld [vmem:[#allocation2 + $0x78] sm:$0xff] }
  0xf5   : > { %v453_v21 = vpop.f32.mrf.mxu3 }
  0xf6   : > { %v467_v28 = vpack.c.bf16 %v453_v21, %v451_v19 }
  0xf7   : > { %v431_v22 = vpop.f32.mrf.mxu0 }
  0xfd   : > { %v456_v23 = vpop.f32.mrf.mxu3 }
  0xff   : > { %v433_v24 = vpop.f32.mrf.mxu0 }
 0x100   : > { %v463_v35 = vpack.c.bf16 %v433_v24, %v431_v22  ;;  %v290_v22 = vld [vmem:[#allocation2 + $0x48] sm:$0xff] }
 0x105   : > { %v458_v25 = vpop.f32.mrf.mxu3 }
 0x106   : > { %v468_v26 = vpack.c.bf16 %v458_v25, %v456_v23 }
 0x107   : > { %v436_v27 = vpop.f32.mrf.mxu0 }
 0x108   : > { %533 = vmatpush.bf16.msra.mxu1 %v468_v26  ;;  %976 = vmatpush.bf16.msra.mxu2 %v468_v26  ;;  %v298_v26 = vld [vmem:[#allocation2 + $0x28] sm:$0xff] }
 0x10c   : > { %534 = vmatpush.bf16.msra.mxu1 %v467_v28  ;;  %977 = vmatpush.bf16.msra.mxu2 %v467_v28 }
 0x10f   : > { %v438_v30 = vpop.f32.mrf.mxu0 }
 0x110   : > { %535 = vmatpush.bf16.msra.mxu1 %v466_v29  ;;  %978 = vmatpush.bf16.msra.mxu2 %v466_v29  ;;  %v464_v34 = vpack.c.bf16 %v438_v30, %v436_v27 }
 0x117   : > { %v441_v31 = vpop.f32.mrf.mxu0 }
 0x11f   : > { %v443_v32 = vpop.f32.mrf.mxu0 }
 0x120   : > { %v465_v33 = vpack.c.bf16 %v443_v32, %v441_v31 }
 0x122   : > { %536 = vmatpush.bf16.msra.mxu1 %v465_v33  ;;  %979 = vmatpush.bf16.msra.mxu2 %v465_v33 }
 0x126   : > { %537 = vmatpush.bf16.msra.mxu1 %v464_v34  ;;  %980 = vmatpush.bf16.msra.mxu2 %v464_v34 }
 0x12a   : > { %538 = vmatpush.bf16.msra.mxu1 %v463_v35  ;;  %981 = vmatpush.bf16.msra.mxu2 %v463_v35 }
 0x12e   : > { %539 = vmatpush.bf16.msra.mxu1 %v462_v36  ;;  %982 = vmatpush.bf16.msra.mxu2 %v462_v36 }
 0x132   : > { %540 = vmatpush.bf16.msra.mxu1 %v461_v16  ;;  %983 = vmatpush.bf16.msra.mxu2 %v461_v16  ;;  %v289_v16 = vld [vmem:[#allocation2 + $0x8] sm:$0xff] }
 0x135   : > { %541 = vmatmul.bf16.vlgmr.msra.gmra.mxu1 %v916_v37  ;;  %561 = vmatmul.bf16.vlgmr.msra.gmra.mxu2 %v920_v38 }
 0x145   : > { %546 = vmatmul.bf16.gmra.mxu1 %v917_v39  ;;  %566 = vmatmul.bf16.gmra.mxu2 %v921_v40 }
 0x155   : > { %551 = vmatmul.bf16.gmra.mxu1 %v918_v41  ;;  %571 = vmatmul.bf16.gmra.mxu2 %v922_v42 }
 0x165   : > { %556 = vmatmul.bf16.gmra.mxu1 %v919_v43  ;;  %576 = vmatmul.bf16.gmra.mxu2 %v923_v44 }
 0x1b2   : > { %v542_v46 = vpop.f32.mrf.mxu1 }
 0x1b3   : > { %v582_v47 = vadd.f32 %v542_v46, %v283_v45 }
 0x1b5   : > { %598 = vst [vmem:[#allocation2 + $0x30] sm:$0xff] %v582_v47 }
 0x1b8   : > { %v562_v49 = vpop.f32.mrf.mxu2 }
 0x1b9   : > { %v590_v51 = vadd.f32 %v562_v49, %v291_v48 }
 0x1ba   : > { %v544_v52 = vpop.f32.mrf.mxu1 }
 0x1bb   : > { %606 = vst [vmem:[#allocation2 + $0x40] sm:$0xff] %v590_v51  ;;  %v583_v53 = vadd.f32 %v544_v52, %v284_v50 }
 0x1bd   : > { %599 = vst [vmem:[#allocation2] sm:$0xff] %v583_v53 }
 0x1c0   : > { %v564_v55 = vpop.f32.mrf.mxu2 }
 0x1c1   : > { %v591_v57 = vadd.f32 %v564_v55, %v292_v54 }
 0x1c2   : > { %v547_v58 = vpop.f32.mrf.mxu1 }
 0x1c3   : > { %607 = vst [vmem:[#allocation2 + $0x20] sm:$0xff] %v591_v57  ;;  %v584_v59 = vadd.f32 %v547_v58, %v285_v56 }
 0x1c5   : > { %600 = vst [vmem:[#allocation2 + $0x58] sm:$0xff] %v584_v59 }
 0x1c8   : > { %v567_v61 = vpop.f32.mrf.mxu2 }
 0x1c9   : > { %v592_v63 = vadd.f32 %v567_v61, %v293_v60 }
 0x1ca   : > { %v549_v0 = vpop.f32.mrf.mxu1 }
 0x1cb   : > { %608 = vst [vmem:[#allocation2 + $0x10] sm:$0xff] %v592_v63  ;;  %v585_v1 = vadd.f32 %v549_v0, %v286_v62 }
 0x1cd   : > { %601 = vst [vmem:[#allocation2 + $0x18] sm:$0xff] %v585_v1 }
 0x1d0   : > { %v569_v3 = vpop.f32.mrf.mxu2 }
 0x1d1   : > { %v593_v5 = vadd.f32 %v569_v3, %v294_v2 }
 0x1d2   : > { %v552_v6 = vpop.f32.mrf.mxu1 }
 0x1d3   : > { %609 = vst [vmem:[#allocation2 + $0x38] sm:$0xff] %v593_v5  ;;  %v586_v7 = vadd.f32 %v552_v6, %v287_v4 }
 0x1d5   : > { %602 = vst [vmem:[#allocation2 + $0x50] sm:$0xff] %v586_v7 }
 0x1d8   : > { %v572_v9 = vpop.f32.mrf.mxu2 }
 0x1d9   : > { %v594_v11 = vadd.f32 %v572_v9, %v295_v8 }
 0x1da   : > { %v554_v12 = vpop.f32.mrf.mxu1 }
 0x1db   : > { %610 = vst [vmem:[#allocation2 + $0x60] sm:$0xff] %v594_v11  ;;  %v587_v13 = vadd.f32 %v554_v12, %v288_v10 }
 0x1dd   : > { %603 = vst [vmem:[#allocation2 + $0x68] sm:$0xff] %v587_v13 }
 0x1e0   : > { %v574_v15 = vpop.f32.mrf.mxu2 }
 0x1e1   : > { %v595_v17 = vadd.f32 %v574_v15, %v296_v14 }
 0x1e2   : > { %v557_v18 = vpop.f32.mrf.mxu1 }
 0x1e3   : > { %611 = vst [vmem:[#allocation2 + $0x70] sm:$0xff] %v595_v17  ;;  %v588_v19 = vadd.f32 %v557_v18, %v289_v16 }
 0x1e5   : > { %604 = vst [vmem:[#allocation2 + $0x8] sm:$0xff] %v588_v19 }
 0x1e8   : > { %v577_v21 = vpop.f32.mrf.mxu2 }
 0x1e9   : > { %v596_v23 = vadd.f32 %v577_v21, %v297_v20 }
 0x1ea   : > { %v559_v24 = vpop.f32.mrf.mxu1 }
 0x1eb   : > { %612 = vst [vmem:[#allocation2 + $0x78] sm:$0xff] %v596_v23  ;;  %v589_v25 = vadd.f32 %v559_v24, %v290_v22 }
 0x1ed   : > { %605 = vst [vmem:[#allocation2 + $0x48] sm:$0xff] %v589_v25 }
 0x1ef   : > { %617 = sbr.rel (%p898_p7) target bundleno = 513 (0x201), region = 48 }
 0x1f0   : > { %v579_v27 = vpop.f32.mrf.mxu2 }
 0x1f1   : > { %v597_v28 = vadd.f32 %v579_v27, %v298_v26 }
 0x1f3   : > { %613 = vst [vmem:[#allocation2 + $0x28] sm:$0xff] %v597_v28 }
 0x1f4   : > { %v618_v29 = vld [vmem:[#allocation2 + $0x30] sm:$0xff]  ;;  %v619_v30 = vld [vmem:[#allocation2] sm:$0xff]  ;;  %v620_v31 = vld [vmem:[#allocation2 + $0x58] sm:$0xff] }
 0x1f5   : > { %v634_v32 = vmax.f32 %v618_v29, 0.0  ;;  %v635_v33 = vmax.f32 %v619_v30, 0.0  ;;  %v621_v34 = vld [vmem:[#allocation2 + $0x18] sm:$0xff]  ;;  %v636_v35 = vmax.f32 %v620_v31, 0.0  ;;  %v622_v36 = vld [vmem:[#allocation2 + $0x50] sm:$0xff]  ;;  %v623_v37 = vld [vmem:[#allocation2 + $0x68] sm:$0xff] }
 0x1f6   : > { %v637_v38 = vmax.f32 %v621_v34, 0.0  ;;  %v638_v39 = vmax.f32 %v622_v36, 0.0  ;;  %v639_v40 = vmax.f32 %v623_v37, 0.0  ;;  %v624_v41 = vld [vmem:[#allocation2 + $0x8] sm:$0xff]  ;;  %v626_v43 = vld [vmem:[#allocation2 + $0x40] sm:$0xff]  ;;  %v628_v49 = vld [vmem:[#allocation2 + $0x10] sm:$0xff] }
 0x1f7   : > { %v625_v42 = vld [vmem:[#allocation2 + $0x48] sm:$0xff]  ;;  %v928_v44 = vpack.c.bf16 %v635_v33, %v634_v32  ;;  %v640_v45 = vmax.f32 %v624_v41, 0.0  ;;  %v627_v47 = vld [vmem:[#allocation2 + $0x20] sm:$0xff]  ;;  %v642_v48 = vmax.f32 %v626_v43, 0.0  ;;  %v629_v50 = vld [vmem:[#allocation2 + $0x38] sm:$0xff]  ;;  %v644_v54 = vmax.f32 %v628_v49, 0.0 }
 0x1f8   : > { %v641_v46 = vmax.f32 %v625_v42, 0.0  ;;  %v933_v51 = vpack.c.bf16 %v637_v38, %v636_v35  ;;  %v938_v52 = vpack.c.bf16 %v639_v40, %v638_v39  ;;  %v643_v53 = vmax.f32 %v627_v47, 0.0  ;;  %v630_v55 = vld [vmem:[#allocation2 + $0x60] sm:$0xff]  ;;  %v631_v56 = vld [vmem:[#allocation2 + $0x70] sm:$0xff]  ;;  %v632_v57 = vld [vmem:[#allocation2 + $0x78] sm:$0xff] }
 0x1f9   : > { %929 = vst [vmem:[%s1402_s18] sm:$0xff] %v928_v44   ;;  %v645_v59 = vmax.f32 %v629_v50, 0.0  ;;  %v646_v60 = vmax.f32 %v630_v55, 0.0  ;;  %v647_v61 = vmax.f32 %v631_v56, 0.0  ;;  %v648_v0 = vmax.f32 %v632_v57, 0.0 }
 0x1fa   : > { %v943_v58 = vpack.c.bf16 %v641_v46, %v640_v45  ;;  %v633_v62 = vld [vmem:[#allocation2 + $0x28] sm:$0xff]  ;;  %965 = vst [vmem:[%s1402_s18 + $0x8] sm:$0xff] %v933_v51   ;;  %v948_v63 = vpack.c.bf16 %v643_v53, %v642_v48 }
 0x1fb   : > { %v649_v1 = vmax.f32 %v633_v62, 0.0  ;;  %966 = vst [vmem:[%s1402_s18 + $0x10] sm:$0xff] %v938_v52   ;;  %v953_v2 = vpack.c.bf16 %v645_v59, %v644_v54  ;;  %v958_v3 = vpack.c.bf16 %v647_v61, %v646_v60 }
 0x1fc   : > { %967 = vst [vmem:[%s1402_s18 + $0x18] sm:$0xff] %v943_v58  }
 0x1fd   : > { %v963_v4 = vpack.c.bf16 %v649_v1, %v648_v0  ;;  %968 = vst [vmem:[%s1402_s18 + $0x20] sm:$0xff] %v948_v63  }
 0x1fe   : > { %969 = vst [vmem:[%s1402_s18 + $0x28] sm:$0xff] %v953_v2  }
 0x1ff   : > { %970 = vst [vmem:[%s1402_s18 + $0x30] sm:$0xff] %v958_v3  }
 0x200   : > { %971 = vst [vmem:[%s1402_s18 + $0x38] sm:$0xff] %v963_v4  }
 0x201 PF: > { %s924_s21 = sshll.u32 %s1233_s22, 6  ;;  %s695_s13 = sshll.u32 %s1402_s18, 4  ;;  %s696_s13 = int_to_ptr.vmem [resolvable:$true] %s695_s13 }
 0x202   : > { %s694_s12 = scalar_lea.hbm %s1503_s4, %s924_s21  ;;  %s683_s8 = scalar_lea.sflag [#allocation5], %s247_s17 }
 0x203   : > { %s697_s14 = sshll.u32 %s694_s12, 4  ;;  %s1143_s22 = scalar_lea.hbm %s1503_s4, 192  ;;  %s698_s14 = int_to_ptr.hbm [resolvable:$true] %s697_s14 }
 0x204   : > { %s1137_s10 = sshra.s32 %s698_s14, 4  ;;  %s1138_s10 = int_to_ptr.hbm [resolvable:$true] %s1137_s10 }
 0x205   : > { %s1139_s7 = scalar_lea.hbm %s1138_s10, 64  ;;  %p1144_p0 = scmp.lt.s32.totalorder %s1138_s10, %s1503_s4 }
 0x206   : > { %p1140_p10 = scmp.ne.s32.totalorder %s1138_s10, %s1139_s7  ;;  %p1145_p1 = scmp.lt.s32.totalorder %s1143_s22, %s1139_s7 }
 0x208   : > { %p1141_p11 = pnand %p1140_p10, %p1359_p12  ;;  %p1146_p4 = por %p1145_p1, %p1144_p0 }
 0x20a   : > { %p1142_p13 = pneg %p1141_p11 }
 0x20c   : > { %p1147_p5 = pnand %p1146_p4, %p1142_p13 }
 0x20e   : > { %1150 = shalt.err (!%p1147_p5)
}
 0x20f   : > { %s1250_s17 = smov 64   ;;  %s1251_s18 = smov 4  }
 0x210   : > { %987 = dma.vmem_to_hbm [thread:$0]  (%p1359_p12), %s696_s13, 1024, %s698_s14, %s683_s8, %s1250_s17, %s1250_s17, %s1251_s18  }
 0x211 PF: > { %p998_p6 = scmp.ge.s32.totalorder %s1245_s25, 2  ;;  %s712_s20 = sand.u32 1, %s1205_s15  }
 0x212   : > { %s713_s28 = scalar_lea.sflag [#allocation5], %s712_s20 }
 0x213   : > { %p994_p8 = pnand %p998_p6, %p1372_p2 }
 0x215   : > { %p995_p3 = pneg %p994_p8 }
 0x217   : > { %1200 = dma.done.wait (%p995_p3), %s713_s28, 1024  }
 0x218   : > { %1202 = vsyncadd (%p995_p3), %s713_s28, 4294966272  ;;  %s20_s25 = sadd.s32 1, %s1245_s25   ;;  %s1521_s21 = sld [smem:[#allocation9_spill]] }
 0x219   : > { %p17_p9 = scmp.ge.s32.totalorder %s20_s25, 11   ;;  %s1522_s17 = sld [smem:[#allocation13_spill]] }
 0x21a   : > { %s1523_s11 = sld [smem:[#allocation10_spill]]  ;;  %s1527_s15 = smov %s1209_s16 }
 0x21b   : > { %s1524_s20 = sld [smem:[#allocation14_spill]]  ;;  %s1529_s18 = smov %s1221_s19 }
 0x21c   : > { %s1525_s9 = sld [smem:[#allocation11_spill]]  ;;  %s1532_s22 = smov %s1241_s24 }
 0x21d   : > { %s1526_s29 = sld [smem:[#allocation12_spill]] }
 0x21e   : > { %s1528_s16 = smov %s1521_s21  ;;  %s1531_s21 = smov %s1237_s23 }
 0x21f   :  { %19 = sbr.rel (!%p17_p9) target bundleno = 9 (0x9), region = 92 }
 0x220   : > { %s1530_s19 = smov %s1523_s11 }
 0x222   : > { %s1533_s23 = smov %s1525_s9 }
 0x223   : > { %s1534_s24 = smov %s1526_s29 }
 0x224   :  { %719 = vsyncpa [#allocation4], 1 }
 0x225   :  { %721 = vsyncpa [#allocation4 + $0x1], 1 }
 0x226   :  { %722 = vsyncpa [#allocation5], 1 }
 0x227   :  { %724 = vsyncpa [#allocation5 + $0x1], 1 }

</bundles_post_ra>
